<compile_context>
chip_gen: v6e
topology: v6e:2x2x1
jax: 0.10.0
libtpu: 0.0.40
codegen_flags: <defaults>
</compile_context>

<pallas_src>
import functools

import jax
import jax.numpy as jnp
from jax.experimental import pallas as pl
from jax.experimental.pallas import tpu as pltpu


_MiB = 1024 * 1024
_CFG_CACHE = None


# ----------------------------------------------------------------------------
# Generation-aware VMEM budgets.
# ----------------------------------------------------------------------------
def _vmem_capacity_bytes():
    try:
        info = pltpu.get_tpu_info()
        cap = getattr(info, "vmem_capacity_bytes", None)
        if cap:
            return int(cap)
    except Exception:
        pass
    return 64 * _MiB  # conservative (v7x-sized) fallback


def _tpu_config():
    """Block budgets / scoped-VMEM limits derived from the chip's VMEM size.

    Budgets are f32-equivalent bytes of one logical block (rows padded to 8
    sublanes, lanes padded to 128) because the in-kernel temporaries
    (x.astype(f32), x*x) are f32 even for bf16 inputs.
    """
    global _CFG_CACHE
    if _CFG_CACHE is None:
        cap = _vmem_capacity_bytes()
        if cap >= 100 * _MiB:
            # v5e / v6e: 128 MiB physical VMEM.
            _CFG_CACHE = dict(
                vmem_limit=72 * _MiB,       # two-pass kernels
                stats_block=16 * _MiB,      # input-only double buffering
                norm_block=10 * _MiB,       # 2x in + 2x out buffers + temps
                fused_slab_max=12 * _MiB,   # whole-activation single-pass gate
                fused_vmem_limit=100 * _MiB,
            )
        else:
            # v7x (64 MiB physical VMEM) or unknown chip.
            _CFG_CACHE = dict(
                vmem_limit=44 * _MiB,
                stats_block=10 * _MiB,
                norm_block=6 * _MiB,
                fused_slab_max=6 * _MiB,
                fused_vmem_limit=52 * _MiB,
            )
    return _CFG_CACHE


def _round_up(x, m):
    return -(-x // m) * m


def _cdiv(a, b):
    return -(-a // b)


# ----------------------------------------------------------------------------
# Tile selection on the 2D (rows = N*C, lanes = H*W) view.
# ----------------------------------------------------------------------------
def _choose_2d_tiles(R, HW, budget_bytes):
    """Returns (r_tile, t_hw, rows_blocks, s_blocks, ragged_hw)."""
    budget_bytes = max(budget_bytes, 8 * 128 * 4)

    # Spatial (lane) tile: whole HW if it fits with >= 8 rows, else the
    # largest multiple of 128 within budget (prefer exact divisors of HW).
    lane_cap = max(128, (budget_bytes // (8 * 4 * 128)) * 128)
    if HW <= lane_cap:
        t_hw = HW
    else:
        t_hw = 0
        d = lane_cap
        while d >= 128:
            if HW % d == 0:
                t_hw = d
                break
            d -= 128
        if t_hw == 0:
            t_hw = lane_cap  # tail block handled by masking / OOB-drop
    lane_pad = _round_up(t_hw, 128)

    # Row (sublane) tile.
    rows_budget = max(8, budget_bytes // (lane_pad * 4))
    if R <= rows_budget:
        r_tile = R                     # full dim (allowed even if not mult. of 8)
    else:
        r_tile = max(8, (rows_budget // 8) * 8)

    rows_blocks = _cdiv(R, r_tile)
    s_blocks = _cdiv(HW, t_hw)
    ragged = (HW % t_hw) != 0
    return r_tile, t_hw, rows_blocks, s_blocks, ragged


# ----------------------------------------------------------------------------
# Kernel 1 (two-pass path): per-row sum and sum-of-squares.
#   x block (r_tile, t_hw); lane reduce into (r_tile, 1) accumulators.
#   Grid = (P, row_blocks, spatial_blocks); P splits the spatial reduction
#   2-ways (uneven handled by index clamp + pl.when skip) so both v7x cores
#   always get work.
# ----------------------------------------------------------------------------
def _stats_kernel(x_ref, sum_ref, sq_ref, sum_acc, sq_acc, *,
                  half, s_blocks, t_hw, hw, ragged, guard):
    p = pl.program_id(0)
    s = pl.program_id(2)
    real_s = p * half + s

    @pl.when(s == 0)
    def _():
        sum_acc[...] = jnp.zeros_like(sum_acc)
        sq_acc[...] = jnp.zeros_like(sq_acc)

    def _accumulate():
        x = x_ref[...].astype(jnp.float32)             # (r_tile, t_hw)
        if ragged:
            lane = jax.lax.broadcasted_iota(jnp.int32, x.shape, 1)
            x = jnp.where(real_s * t_hw + lane < hw, x, 0.0)
        sum_acc[...] += jnp.sum(x, axis=1, keepdims=True)
        sq_acc[...] += jnp.sum(x * x, axis=1, keepdims=True)

    if guard:
        pl.when(real_s < s_blocks)(_accumulate)
    else:
        _accumulate()

    @pl.when(s == half - 1)
    def _():
        sum_ref[0] = sum_acc[...]
        sq_ref[0] = sq_acc[...]


def _compute_row_stats(x2d, r_tile, t_hw, rows_blocks, s_blocks, ragged,
                       vmem_limit):
    R, HW = x2d.shape
    P = 2 if s_blocks >= 2 else 1
    half = _cdiv(s_blocks, P)
    guard = (P * half != s_blocks)

    kern = functools.partial(_stats_kernel, half=half, s_blocks=s_blocks,
                             t_hw=t_hw, hw=HW, ragged=ragged, guard=guard)

    def x_map(p, r, s):
        return (r, jnp.minimum(p * half + s, s_blocks - 1))

    def out_map(p, r, s):
        return (p, r, 0)

    sums, sqs = pl.pallas_call(
        kern,
        out_shape=(jax.ShapeDtypeStruct((P, R, 1), jnp.float32),
                   jax.ShapeDtypeStruct((P, R, 1), jnp.float32)),
        grid_spec=pltpu.PrefetchScalarGridSpec(
            num_scalar_prefetch=0,
            grid=(P, rows_blocks, half),
            in_specs=[pl.BlockSpec((r_tile, t_hw), x_map)],
            out_specs=[pl.BlockSpec((1, r_tile, 1), out_map),
                       pl.BlockSpec((1, r_tile, 1), out_map)],
            scratch_shapes=[pltpu.VMEM((r_tile, 1), jnp.float32),
                            pltpu.VMEM((r_tile, 1), jnp.float32)]),
        compiler_params=pltpu.CompilerParams(
            dimension_semantics=("parallel", "parallel", "arbitrary"),
            vmem_limit_bytes=vmem_limit),
    )(x2d)

    row_sum = jnp.sum(sums, axis=0)[:, 0]   # (R,)
    row_sq = jnp.sum(sqs, axis=0)[:, 0]     # (R,)
    return row_sum, row_sq


# ----------------------------------------------------------------------------
# Kernel 2 (two-pass path): lane-dense elementwise  y = x * scale + shift
#   on the 2D (N*C, HW) view with per-row (r_tile, 1) coefficients.
# ----------------------------------------------------------------------------
def _norm_kernel(x_ref, scale_ref, shift_ref, o_ref):
    x = x_ref[...].astype(jnp.float32)                       # (r_tile, t_hw)
    o_ref[...] = (x * scale_ref[...] + shift_ref[...]).astype(o_ref.dtype)


def _normalize_pass(x2d, scale_c, shift_c, N, budget_bytes, vmem_limit):
    R, HW = x2d.shape
    scale_rows = jnp.tile(scale_c, N).reshape(R, 1).astype(jnp.float32)
    shift_rows = jnp.tile(shift_c, N).reshape(R, 1).astype(jnp.float32)
    r_tile, t_hw, rows_blocks, s_blocks, _ = _choose_2d_tiles(R, HW, budget_bytes)
    return pl.pallas_call(
        _norm_kernel,
        out_shape=jax.ShapeDtypeStruct((R, HW), x2d.dtype),
        grid_spec=pltpu.PrefetchScalarGridSpec(
            num_scalar_prefetch=0,
            grid=(rows_blocks, s_blocks),
            in_specs=[pl.BlockSpec((r_tile, t_hw), lambda r, s: (r, s)),
                      pl.BlockSpec((r_tile, 1), lambda r, s: (r, 0)),
                      pl.BlockSpec((r_tile, 1), lambda r, s: (r, 0))],
            out_specs=pl.BlockSpec((r_tile, t_hw), lambda r, s: (r, s))),
        compiler_params=pltpu.CompilerParams(
            dimension_semantics=("parallel", "parallel"),
            vmem_limit_bytes=vmem_limit),
    )(x2d, scale_rows, shift_rows)


# ----------------------------------------------------------------------------
# Kernel 3 (fused path): whole slab in VMEM -> stats + normalize + store in a
# single pass (x read once, y written once). Only used for training when the
# padded slab is below a VMEM-derived threshold.
# ----------------------------------------------------------------------------
def _fused_kernel(x_ref, w_ref, b_ref, gm_ref, gm2_ref,
                  y_ref, mean_ref, var_ref, *, eps, inv_n, modify):
    x = x_ref[...].astype(jnp.float32)                       # (N, C, HW)
    s = jnp.sum(jnp.sum(x, axis=2, keepdims=True), axis=0)       # (C, 1)
    sq = jnp.sum(jnp.sum(x * x, axis=2, keepdims=True), axis=0)  # (C, 1)
    mean = s * inv_n
    var = jnp.maximum(sq * inv_n - mean * mean, 0.0)
    mean_ref[...] = mean          # raw batch stats (EMAs done on host)
    var_ref[...] = var
    if modify:                    # static python bool
        mean = (mean + gm_ref[...]) * 0.5   # gm_ref = global_mean / m
        var = (var + gm2_ref[...]) * 0.5
    inv_std = jax.lax.rsqrt(var + eps)
    scale = w_ref[...] * inv_std
    shift = b_ref[...] - mean * scale
    y_ref[...] = (x * scale + shift).astype(y_ref.dtype)


def _fused_train(x3d, w, b, gm_div, gm2_div, *, eps, modify, vmem_limit):
    N, C, HW = x3d.shape
    kern = functools.partial(_fused_kernel, eps=eps,
                             inv_n=1.0 / float(N * HW), modify=modify)
    vec = pl.BlockSpec((C, 1), lambda i: (0, 0))
    y, mean, var = pl.pallas_call(
        kern,
        out_shape=(jax.ShapeDtypeStruct((N, C, HW), x3d.dtype),
                   jax.ShapeDtypeStruct((C, 1), jnp.float32),
                   jax.ShapeDtypeStruct((C, 1), jnp.float32)),
        grid_spec=pltpu.PrefetchScalarGridSpec(
            num_scalar_prefetch=0,
            grid=(1,),
            in_specs=[pl.BlockSpec((N, C, HW), lambda i: (0, 0, 0)),
                      vec, vec, vec, vec],
            out_specs=[pl.BlockSpec((N, C, HW), lambda i: (0, 0, 0)),
                       pl.BlockSpec((C, 1), lambda i: (0, 0)),
                       pl.BlockSpec((C, 1), lambda i: (0, 0))]),
        compiler_params=pltpu.CompilerParams(
            dimension_semantics=("arbitrary",),
            vmem_limit_bytes=vmem_limit),
    )(x3d, w.reshape(C, 1), b.reshape(C, 1), gm_div, gm2_div)
    return y, mean[:, 0], var[:, 0]


# ----------------------------------------------------------------------------
# Forward pass mirroring the PyTorch module (returns (y, new_buffers)).
# ----------------------------------------------------------------------------
def batchnorm2d_forward(
    x,                      # (N, C, H, W)
    weight,                 # (C,)
    bias,                   # (C,)
    running_mean,           # (C,)
    running_var,            # (C,)
    local_mean,             # (C,)
    local_mean2,            # (C,)
    global_mean,            # (C,)
    global_mean2,           # (C,)
    num_batches_tracked,    # scalar int
    *,
    eps=1e-5,
    momentum=0.1,
    affine=True,
    track_running_stats=True,
    training=True,
    modify=False,
    m=2,
    _force_two_pass=False,      # testing hook: skip the fused path
    _test_budget_bytes=None,    # testing hook: force tiny two-pass blocks
):
    N, C, H, W = x.shape
    HW = H * W
    R = N * C
    eps = float(eps)
    cfg = _tpu_config()

    # Free, layout-preserving reshapes of the contiguous NCHW input.
    x3d = x.reshape(N, C, HW)
    x2d = x.reshape(R, HW)

    # exponential_average_factor logic (matches the PyTorch module).
    eaf = 0.0
    new_nbt = num_batches_tracked
    if training and track_running_stats:
        new_nbt = num_batches_tracked + 1
        if momentum is None:
            eaf = 1.0 / jnp.asarray(new_nbt, jnp.float32)
        else:
            eaf = momentum

    if affine:
        w = weight.astype(jnp.float32)
        b = bias.astype(jnp.float32)
    else:
        w = jnp.ones((C,), jnp.float32)
        b = jnp.zeros((C,), jnp.float32)

    new_running_mean, new_running_var = running_mean, running_var
    new_local_mean, new_local_mean2 = local_mean, local_mean2

    if training:
        n_count = float(N * HW)
        pad_c = _round_up(C, 8)
        slab_cost = N * pad_c * _round_up(HW, 128) * 4    # f32-equivalent bytes
        use_fused = ((not _force_two_pass) and _test_budget_bytes is None
                     and slab_cost <= cfg["fused_slab_max"])

        if use_fused:
            gm_div = (global_mean.astype(jnp.float32) / float(m)).reshape(C, 1)
            gm2_div = (global_mean2.astype(jnp.float32) / float(m)).reshape(C, 1)
            y3d, mean, var = _fused_train(
                x3d, w, b, gm_div, gm2_div, eps=eps, modify=modify,
                vmem_limit=cfg["fused_vmem_limit"])
            y = y3d.reshape(N, C, H, W)
        else:
            stats_budget = (_test_budget_bytes if _test_budget_bytes is not None
                            else cfg["stats_block"])
            r_tile, t_hw, rb, sb, ragged = _choose_2d_tiles(R, HW, stats_budget)
            row_sum, row_sq = _compute_row_stats(
                x2d, r_tile, t_hw, rb, sb, ragged, cfg["vmem_limit"])
            ch_sum = row_sum.reshape(N, C).sum(axis=0)
            ch_sq = row_sq.reshape(N, C).sum(axis=0)
            mean = ch_sum / n_count
            # TODO(synk): Welford/Chan combine for extreme |mean|/std inputs.
            var = jnp.maximum(ch_sq / n_count - mean * mean, 0.0)
            y = None  # normalized below

        # EMAs use the RAW batch stats (modify happens afterwards, as in torch).
        new_local_mean = eaf * mean + (1.0 - eaf) * local_mean
        new_local_mean2 = eaf * var + (1.0 - eaf) * local_mean2

        if modify:
            mean_n = (mean + global_mean.astype(jnp.float32) / float(m)) / 2.0
            var_n = (var + global_mean2.astype(jnp.float32) / float(m)) / 2.0
        else:
            mean_n, var_n = mean, var

        if track_running_stats:
            # Guard n/(n-1) against n == 1 (PyTorch would produce inf/nan).
            unbias = n_count / max(n_count - 1.0, 1.0)
            new_running_mean = eaf * mean_n + (1.0 - eaf) * running_mean
            new_running_var = (eaf * var_n * unbias
                               + (1.0 - eaf) * running_var)

        if not use_fused:
            inv_std = jax.lax.rsqrt(var_n + eps)
            scale = w * inv_std
            shift = b - mean_n * scale
            norm_budget = (_test_budget_bytes if _test_budget_bytes is not None
                           else cfg["norm_block"])
            y2d = _normalize_pass(x2d, scale, shift, N, norm_budget,
                                  cfg["vmem_limit"])
            y = y2d.reshape(N, C, H, W)
    else:
        mean_n = running_mean.astype(jnp.float32)
        var_n = running_var.astype(jnp.float32)
        inv_std = jax.lax.rsqrt(var_n + eps)
        scale = w * inv_std
        shift = b - mean_n * scale
        norm_budget = (_test_budget_bytes if _test_budget_bytes is not None
                       else cfg["norm_block"])
        y2d = _normalize_pass(x2d, scale, shift, N, norm_budget,
                              cfg["vmem_limit"])
        y = y2d.reshape(N, C, H, W)

    buffers = {
        "running_mean": new_running_mean,
        "running_var": new_running_var,
        "local_mean": new_local_mean,
        "local_mean2": new_local_mean2,
        "num_batches_tracked": new_nbt,
    }
    return y, buffers


# ----------------------------------------------------------------------------
# Self-test.
# ----------------------------------------------------------------------------
if __name__ == "__main__":
    key = jax.random.PRNGKey(0)
    N, C, H, W = 2, 4, 16, 16
    x = jax.random.normal(key, (N, C, H, W), dtype=jnp.float32) * 2.0 + 0.5

    weight = jnp.ones((C,), jnp.float32)
    bias = jnp.zeros((C,), jnp.float32)
    running_mean = jnp.zeros((C,), jnp.float32)
    running_var = jnp.ones((C,), jnp.float32)
    local_mean = jnp.zeros((C,), jnp.float32)
    local_mean2 = jnp.ones((C,), jnp.float32)
    global_mean = jnp.zeros((C,), jnp.float32)
    global_mean2 = jnp.ones((C,), jnp.float32)
    nbt = jnp.array(0, jnp.int32)

    def check(y, bufs, xin, tag):
        xf = xin.astype(jnp.float32)
        mean_ref = xf.mean(axis=(0, 2, 3))
        var_ref = xf.var(axis=(0, 2, 3))
        y_ref = (xf - mean_ref[None, :, None, None]) / jnp.sqrt(
            var_ref[None, :, None, None] + 1e-5)
        assert y.shape == xin.shape, tag
        assert jnp.allclose(y, y_ref, atol=1e-4, rtol=1e-4), f"y mismatch ({tag})"
        n = float(xin.shape[0] * xin.shape[2] * xin.shape[3])
        cshape = (xin.shape[1],)
        rm_ref = 0.1 * mean_ref
        rv_ref = 0.1 * var_ref * n / (n - 1.0) + 0.9 * jnp.ones(cshape, jnp.float32)
        lm_ref = 0.1 * mean_ref
        lm2_ref = 0.1 * var_ref + 0.9 * jnp.ones(cshape, jnp.float32)
        assert jnp.allclose(bufs["running_mean"], rm_ref, atol=1e-4, rtol=1e-4), tag
        assert jnp.allclose(bufs["running_var"], rv_ref, atol=1e-4, rtol=1e-4), tag
        assert jnp.allclose(bufs["local_mean"], lm_ref, atol=1e-4, rtol=1e-4), tag
        assert jnp.allclose(bufs["local_mean2"], lm2_ref, atol=1e-4, rtol=1e-4), tag
        assert int(bufs["num_batches_tracked"]) == 1, tag

    common = dict(eps=1e-5, momentum=0.1, affine=True, track_running_stats=True,
                  training=True, modify=False, m=2)

    # 1) fused single-pass path (slab fits VMEM).
    y1, b1 = batchnorm2d_forward(x, weight, bias, running_mean, running_var,
                                 local_mean, local_mean2, global_mean,
                                 global_mean2, nbt, **common)
    jax.block_until_ready(y1)
    check(y1, b1, x, "fused")

    # 2) two-pass path (stats + normalize kernels), exact tiles.
    y2, b2 = batchnorm2d_forward(x, weight, bias, running_mean, running_var,
                                 local_mean, local_mean2, global_mean,
                                 global_mean2, nbt, **common,
                                 _force_two_pass=True)
    jax.block_until_ready(y2)
    check(y2, b2, x, "two-pass")

    # 3) ragged spatial extent with a tiny forced block budget: exercises the
    #    masked tail in the stats kernel, the 2-way partial reduction split and
    #    OOB-dropped stores in the normalize kernel.
    N3, C3, H3, W3 = 1, 8, 3, 1000
    x3 = jax.random.normal(jax.random.PRNGKey(1), (N3, C3, H3, W3),
                           dtype=jnp.float32) - 0.3
    z3 = jnp.zeros((C3,), jnp.float32)
    o3 = jnp.ones((C3,), jnp.float32)
    y3, b3 = batchnorm2d_forward(x3, o3, z3, z3, o3, z3, o3, z3, o3,
                                 jnp.array(0, jnp.int32), **common,
                                 _force_two_pass=True,
                                 _test_budget_bytes=64 * 1024)
    jax.block_until_ready(y3)
    check(y3, b3, x3, "ragged")

    # 4) eval mode (running-stat normalization only).
    rm = jnp.arange(C, dtype=jnp.float32) * 0.1
    rv = jnp.arange(1, C + 1, dtype=jnp.float32) * 0.5
    y4, b4 = batchnorm2d_forward(x, weight, bias, rm, rv,
                                 local_mean, local_mean2, global_mean,
                                 global_mean2, nbt, eps=1e-5, momentum=0.1,
                                 affine=True, track_running_stats=True,
                                 training=False, modify=False, m=2)
    jax.block_until_ready(y4)
    y4_ref = (x - rm[None, :, None, None]) / jnp.sqrt(rv[None, :, None, None] + 1e-5)
    assert jnp.allclose(y4, y4_ref, atol=1e-4, rtol=1e-4), "y mismatch (eval)"
    assert jnp.allclose(b4["running_mean"], rm) and jnp.allclose(b4["running_var"], rv)

    print("KERNEL_OK")
</pallas_src>

<mosaic_0001>
module attributes {stable_mosaic.version = 11 : i64} {
  func.func @_fused_kernel(%arg0: i32, %arg1: memref<2x4x256xf32, #tpu.memory_space<vmem>>, %arg2: memref<4x1xf32, #tpu.memory_space<vmem>>, %arg3: memref<4x1xf32, #tpu.memory_space<vmem>>, %arg4: memref<4x1xf32, #tpu.memory_space<vmem>>, %arg5: memref<4x1xf32, #tpu.memory_space<vmem>>, %arg6: memref<2x4x256xf32, #tpu.memory_space<vmem>>, %arg7: memref<4x1xf32, #tpu.memory_space<vmem>>, %arg8: memref<4x1xf32, #tpu.memory_space<vmem>>) attributes {dimension_semantics = [#tpu.dimension_semantics<arbitrary>], iteration_bounds = array<i64: 1>, scalar_prefetch = 0 : i64, scratch_operands = 0 : i64, tpu.core_type = #tpu.core_type<tc>, window_params = [{pipeline_mode = #tpu.pipeline_mode<synchronous>, transform_indices = @transform_0, window_bounds = array<i64: 2, 4, 256>}, {pipeline_mode = #tpu.pipeline_mode<synchronous>, transform_indices = @transform_1, window_bounds = array<i64: 4, 1>}, {pipeline_mode = #tpu.pipeline_mode<synchronous>, transform_indices = @transform_2, window_bounds = array<i64: 4, 1>}, {pipeline_mode = #tpu.pipeline_mode<synchronous>, transform_indices = @transform_3, window_bounds = array<i64: 4, 1>}, {pipeline_mode = #tpu.pipeline_mode<synchronous>, transform_indices = @transform_4, window_bounds = array<i64: 4, 1>}, {pipeline_mode = #tpu.pipeline_mode<synchronous>, transform_indices = @transform_5, window_bounds = array<i64: 2, 4, 256>}, {pipeline_mode = #tpu.pipeline_mode<synchronous>, transform_indices = @transform_6, window_bounds = array<i64: 4, 1>}, {pipeline_mode = #tpu.pipeline_mode<synchronous>, transform_indices = @transform_7, window_bounds = array<i64: 4, 1>}]} {
    %c0 = arith.constant 0 : index
    %c0_0 = arith.constant 0 : index
    %c0_1 = arith.constant 0 : index
    %0 = vector.load %arg1[%c0, %c0_0, %c0_1] : memref<2x4x256xf32, #tpu.memory_space<vmem>>, vector<2x4x256xf32>
    %cst = arith.constant dense<0.000000e+00> : vector<2x4xf32>
    %1 = vector.multi_reduction <add>, %0, %cst [2] : vector<2x4x256xf32> to vector<2x4xf32>
    %2 = vector.shape_cast %1 : vector<2x4xf32> to vector<2x4x1xf32>
    %cst_2 = arith.constant dense<0.000000e+00> : vector<4x1xf32>
    %3 = vector.multi_reduction <add>, %2, %cst_2 [0] : vector<2x4x1xf32> to vector<4x1xf32>
    %4 = arith.mulf %0, %0 : vector<2x4x256xf32>
    %cst_3 = arith.constant dense<0.000000e+00> : vector<2x4xf32>
    %5 = vector.multi_reduction <add>, %4, %cst_3 [2] : vector<2x4x256xf32> to vector<2x4xf32>
    %6 = vector.shape_cast %5 : vector<2x4xf32> to vector<2x4x1xf32>
    %cst_4 = arith.constant dense<0.000000e+00> : vector<4x1xf32>
    %7 = vector.multi_reduction <add>, %6, %cst_4 [0] : vector<2x4x1xf32> to vector<4x1xf32>
    %cst_5 = arith.constant 0.001953125 : f32
    %8 = vector.broadcast %cst_5 : f32 to vector<4x1xf32>
    %9 = arith.mulf %3, %8 : vector<4x1xf32>
    %cst_6 = arith.constant 0.001953125 : f32
    %10 = vector.broadcast %cst_6 : f32 to vector<4x1xf32>
    %11 = arith.mulf %7, %10 : vector<4x1xf32>
    %12 = arith.mulf %9, %9 : vector<4x1xf32>
    %13 = arith.subf %11, %12 : vector<4x1xf32>
    %cst_7 = arith.constant 0.000000e+00 : f32
    %14 = vector.broadcast %cst_7 : f32 to vector<4x1xf32>
    %15 = arith.maximumf %13, %14 : vector<4x1xf32>
    %c0_8 = arith.constant 0 : index
    %c0_9 = arith.constant 0 : index
    %16 = vector.load %arg7[%c0_8, %c0_9] : memref<4x1xf32, #tpu.memory_space<vmem>>, vector<4x1xf32>
    tpu.vector_store %arg7[%c0_8, %c0_9], %9 {strides = array<i32>} : memref<4x1xf32, #tpu.memory_space<vmem>>, vector<4x1xf32>,
    %c0_10 = arith.constant 0 : index
    %c0_11 = arith.constant 0 : index
    %17 = vector.load %arg8[%c0_10, %c0_11] : memref<4x1xf32, #tpu.memory_space<vmem>>, vector<4x1xf32>
    tpu.vector_store %arg8[%c0_10, %c0_11], %15 {strides = array<i32>} : memref<4x1xf32, #tpu.memory_space<vmem>>, vector<4x1xf32>,
    %cst_12 = arith.constant 9.99999974E-6 : f32
    %18 = vector.broadcast %cst_12 : f32 to vector<4x1xf32>
    %19 = arith.addf %15, %18 : vector<4x1xf32>
    %20 = math.rsqrt %19 : vector<4x1xf32>
    %c0_13 = arith.constant 0 : index
    %c0_14 = arith.constant 0 : index
    %21 = vector.load %arg2[%c0_13, %c0_14] : memref<4x1xf32, #tpu.memory_space<vmem>>, vector<4x1xf32>
    %22 = arith.mulf %21, %20 : vector<4x1xf32>
    %c0_15 = arith.constant 0 : index
    %c0_16 = arith.constant 0 : index
    %23 = vector.load %arg3[%c0_15, %c0_16] : memref<4x1xf32, #tpu.memory_space<vmem>>, vector<4x1xf32>
    %24 = arith.mulf %9, %22 : vector<4x1xf32>
    %25 = arith.subf %23, %24 : vector<4x1xf32>
    %26 = vector.shape_cast %22 : vector<4x1xf32> to vector<1x4x1xf32>
    %27 = vector.broadcast %26 : vector<1x4x1xf32> to vector<2x4x256xf32>
    %28 = arith.mulf %0, %27 : vector<2x4x256xf32>
    %29 = vector.shape_cast %25 : vector<4x1xf32> to vector<1x4x1xf32>
    %30 = vector.broadcast %29 : vector<1x4x1xf32> to vector<2x4x256xf32>
    %31 = arith.addf %28, %30 : vector<2x4x256xf32>
    %c0_17 = arith.constant 0 : index
    %c0_18 = arith.constant 0 : index
    %c0_19 = arith.constant 0 : index
    %32 = vector.load %arg6[%c0_17, %c0_18, %c0_19] : memref<2x4x256xf32, #tpu.memory_space<vmem>>, vector<2x4x256xf32>
    tpu.vector_store %arg6[%c0_17, %c0_18, %c0_19], %31 {strides = array<i32>} : memref<2x4x256xf32, #tpu.memory_space<vmem>>, vector<2x4x256xf32>,
    return
  }
  func.func @transform_0(%arg0: i32) -> (i32, i32, i32) {
    %c0_i32 = arith.constant 0 : i32
    %c0_i32_0 = arith.constant 0 : i32
    %c0_i32_1 = arith.constant 0 : i32
    %c0_i32_2 = arith.constant 0 : i32
    return %c0_i32, %c0_i32_0, %c0_i32_1 : i32, i32, i32
  }
  func.func @transform_1(%arg0: i32) -> (i32, i32) {
    %c0_i32 = arith.constant 0 : i32
    %c0_i32_0 = arith.constant 0 : i32
    %c0_i32_1 = arith.constant 0 : i32
    return %c0_i32, %c0_i32_0 : i32, i32
  }
  func.func @transform_2(%arg0: i32) -> (i32, i32) {
    %c0_i32 = arith.constant 0 : i32
    %c0_i32_0 = arith.constant 0 : i32
    %c0_i32_1 = arith.constant 0 : i32
    return %c0_i32, %c0_i32_0 : i32, i32
  }
  func.func @transform_3(%arg0: i32) -> (i32, i32) {
    %c0_i32 = arith.constant 0 : i32
    %c0_i32_0 = arith.constant 0 : i32
    %c0_i32_1 = arith.constant 0 : i32
    return %c0_i32, %c0_i32_0 : i32, i32
  }
  func.func @transform_4(%arg0: i32) -> (i32, i32) {
    %c0_i32 = arith.constant 0 : i32
    %c0_i32_0 = arith.constant 0 : i32
    %c0_i32_1 = arith.constant 0 : i32
    return %c0_i32, %c0_i32_0 : i32, i32
  }
  func.func @transform_5(%arg0: i32) -> (i32, i32, i32) {
    %c0_i32 = arith.constant 0 : i32
    %c0_i32_0 = arith.constant 0 : i32
    %c0_i32_1 = arith.constant 0 : i32
    %c0_i32_2 = arith.constant 0 : i32
    return %c0_i32, %c0_i32_0, %c0_i32_1 : i32, i32, i32
  }
  func.func @transform_6(%arg0: i32) -> (i32, i32) {
    %c0_i32 = arith.constant 0 : i32
    %c0_i32_0 = arith.constant 0 : i32
    %c0_i32_1 = arith.constant 0 : i32
    return %c0_i32, %c0_i32_0 : i32, i32
  }
  func.func @transform_7(%arg0: i32) -> (i32, i32) {
    %c0_i32 = arith.constant 0 : i32
    %c0_i32_0 = arith.constant 0 : i32
    %c0_i32_1 = arith.constant 0 : i32
    return %c0_i32, %c0_i32_0 : i32, i32
  }
}

</mosaic_0001>

<bundles_post_ra>
// kernel: tpu_custom_call.1
= control target key start
LH: loop header
LB: loop body
LE: loop exit
PB: predicated region body
PF: predicated region fallthrough
CT: control target
= control target key end

     0   :  { %vm32_vm0 = vcmask 1043456   ;;  %s263_s0 = inlined_call_operand.vmem [shape: f32[2,4,256], index: 0, kind: input, shape index: {}]   ;;  %s264_s1 = inlined_call_operand.vmem [shape: f32[4,1], index: 1, kind: input, shape index: {}]   ;;  %s265_s2 = inlined_call_operand.vmem [shape: f32[4,1], index: 2, kind: input, shape index: {}]   ;;  %s266_s3 = inlined_call_operand.vmem [shape: f32[4,1], index: 3, kind: input, shape index: {}]   ;;  %s267_s4 = inlined_call_operand.vmem [shape: f32[4,1], index: 4, kind: input, shape index: {}]   ;;  %s268_s5 = inlined_call_operand.hbm [shape: f32[2,4,256], index: 5, kind: output, shape index: {0}]   ;;  %s269_s6 = inlined_call_operand.vmem [shape: f32[4,1], index: 6, kind: output, shape index: {1}]   ;;  %s270_s7 = inlined_call_operand.vmem [shape: f32[4,1], index: 7, kind: output, shape index: {2}]  }
   0x1   :  { %v217_v0 = vld [vmem:[%s263_s0] sm:$0xff]  ;;  %v222_v1 = vld [vmem:[%s263_s0 + $0x8] sm:$0xff] }
   0x2   :  { %13 = vsyncpa [#allocation3], 0  ;;  %v28_v2 = vcombine.high %v217_v0, %v217_v0  ;;  %v33_v3 = vsel %vm32_vm0, %v217_v0, 0.0  ;;  %v46_v4 = vmul.f32 %v217_v0, %v217_v0  ;;  %v29_v5 = vcombine.high %v222_v1, %v222_v1  ;;  %v77_v37 = vld [vmem:[%s264_s1] sm:$0xf] }
   0x3   :  { %v38_v6 = vsel %vm32_vm0, %v222_v1, 0.0  ;;  %v47_v7 = vmul.f32 %v222_v1, %v222_v1  ;;  %v169_v20 = vmov 0   ;;  %vm72_vm1 = vcmask 3072   ;;  %v79_v40 = vld [vmem:[%s265_s2] sm:$0xf] }
   0x4   :  { %v34_v8 = vsel %vm32_vm0, %v28_v2, 0.0  ;;  %v50_v9 = vcombine.high %v46_v4, %v46_v4  ;;  %v54_v10 = vsel %vm32_vm0, %v46_v4, 0.0  ;;  %v39_v11 = vsel %vm32_vm0, %v29_v5, 0.0  ;;  %141 = vset.pattern.permute.xlu0 %v169_v20  ;;  %142 = vset.pattern.permute.xlu1 %v169_v20 }
   0x5   :  { %v35_v12 = vadd.f32 %v34_v8, %v33_v3  ;;  %v51_v13 = vcombine.high %v47_v7, %v47_v7  ;;  %v59_v15 = vsel %vm32_vm0, %v47_v7, 0.0  ;;  %v40_v17 = vadd.f32 %v39_v11, %v38_v6 }
   0x6   :  { %v55_v14 = vsel %vm32_vm0, %v50_v9, 0.0  ;;  %v170_v43 = vmov 839922192   ;;  %v89_v45 = vlaneseq }
   0x7   :  { %36 = vadd.xlane.f32.xlu0 %v35_v12  ;;  %v56_v16 = vadd.f32 %v55_v14, %v54_v10  ;;  %v60_v18 = vsel %vm32_vm0, %v51_v13, 0.0  ;;  %v87_v44 = vunpack.c.l.s4 %v170_v43 }
   0x8   :  { %v61_v19 = vadd.f32 %v60_v18, %v59_v15  ;;  %v90_v47 = vshrl.u32 %v89_v45, 7 }
   0x9   :  { %57 = vadd.xlane.f32.xlu1 %v56_v16  ;;  %v88_v46 = vunpack.c.0.s8 %v87_v44 }
   0xb   :  { %41 = vadd.xlane.f32.xlu0 %v40_v17  ;;  %v91_v48 = vsub.s32 %v88_v46, %v90_v47 }
   0xd   :  { %62 = vadd.xlane.f32.xlu1 %v61_v19 }
  0x90   :  { %v37_v21 = vpop.xlane.xlu0 %36 }
  0x91   :  { %v43_v24 = vsel %vm32_vm0, %v37_v21, 0.0 }
  0x92   :  { %v58_v22 = vpop.xlane.xlu1 %57 }
  0x93   :  { %v64_v28 = vsel %vm32_vm0, %v58_v22, 0.0 }
  0x94   :  { %v42_v23 = vpop.xlane.xlu0 %41 }
  0x95   :  { %v44_v25 = vsel %vm32_vm0, %v42_v23, 0.0 }
  0x96   :  { %v45_v26 = vadd.f32 %v44_v25, %v43_v24  ;;  %v63_v27 = vpop.xlane.xlu1 %62 }
  0x97   :  { %v65_v29 = vsel %vm32_vm0, %v63_v27, 0.0 }
  0x98   :  { %v67_v30 = vmul.f32 0.001953125, %v45_v26  ;;  %v66_v31 = vadd.f32 %v65_v29, %v64_v28 }
  0x9a   :  { %73 = vst.msk [vmem:[%s269_s6] sm:$0xf] %vm72_vm1, %v67_v30  ;;  %v68_v32 = vmul.f32 0.001953125, %v66_v31  ;;  %v69_v33 = vmul.f32 %v67_v30, %v67_v30  ;;  %s171_s6 = smov [#allocation2]  }
  0x9b   :  { %s117_s1 = sshll.u32 %s171_s6, 4  ;;  %s118_s1 = int_to_ptr.vmem [resolvable:$true] %s117_s1 }
  0x9c   :  { %v70_v34 = vsub.f32 %v68_v32, %v69_v33  ;;  %s147_s2 = scalar_lea.vmem %s118_s1, 256  ;;  %p152_p1 = scmp.lt.s32.totalorder %s118_s1, %s118_s1 }
  0x9d   :  { %p148_p0 = scmp.ne.s32.totalorder %s118_s1, %s147_s2  ;;  %p153_p2 = scmp.lt.s32.totalorder %s147_s2, %s147_s2 }
  0x9e   :  { %v71_v35 = vmax.f32 %v70_v34, 0.0 }
  0x9f   :  { %p154_p3 = por %p153_p2, %p152_p1 }
  0xa0   :  { %74 = vst.msk [vmem:[%s270_s7] sm:$0xf] %vm72_vm1, %v71_v35  ;;  %v75_v36 = vadd.f32 1e-05, %v71_v35 }
  0xa1   :  { %p155_p4 = pnand %p154_p3, %p148_p0 }
  0xa2   :  { %145 = vrsqrt.f32 %v75_v36 }
  0xaf   :  { %v146_v38 = vpop.eup %145 }
  0xb0   :  { %v78_v39 = vmul.f32 %v146_v38, %v77_v37 }
  0xb2   :  { %84 = vperm.xlu0 %141, %v78_v39   ;;  %v80_v41 = vmul.f32 %v78_v39, %v67_v30 }
  0xb4   :  { %v81_v42 = vsub.f32 %v79_v40, %v80_v41 }
  0xb6   :  { %98 = vperm.xlu1 %142, %v81_v42  }
 0x12d   :  { %v85_v49 = vpop.permute.xlu0 %84 }
 0x12e   :  { %v92_v50 = vrot.slane %v85_v49, %v91_v48 }
 0x130   :  { %v94_v52 = vmul.f32 %v92_v50, %v217_v0  ;;  %v95_v53 = vmul.f32 %v92_v50, %v222_v1 }
 0x131   :  { %v99_v51 = vpop.permute.xlu1 %98 }
 0x132   :  { %v106_v54 = vrot.slane %v99_v51, %v91_v48 }
 0x134   :  { %v108_v55 = vadd.f32 %v106_v54, %v94_v52  ;;  %v109_v56 = vadd.f32 %v106_v54, %v95_v53 }
 0x136   :  { %110 = vst [vmem:[#allocation2] sm:$0xff] %v108_v55  ;;  %111 = vst [vmem:[#allocation2 + $0x8] sm:$0xff] %v109_v56 }
 0x137   :  { %158 = shalt.err (!%p155_p4)
}
 0x138   :  { %s172_s7 = smov 128   ;;  %s173_s10 = smov 8  }
 0x139   :  { %123 = dma.vmem_to_hbm [thread:$0]  %s118_s1, 256, %s268_s5, [#allocation3], %s172_s7, %s172_s7, %s173_s10  }
 0x13a   :  { %167 = dma.done.wait [#allocation3], 256  }
 0x13b   :  { %168 = vsyncadd [#allocation3], 4294967040 }
 0x13c   :  { %135 = vsyncpa [#allocation3], 1 }

</bundles_post_ra>
